<compile_context>
chip_gen: v7x
topology: tpu7x:2x2x1
jax: 0.10.0
libtpu: 0.0.40
codegen_flags: <defaults>
</compile_context>

<pallas_src>
import jax
import jax.numpy as jnp
from jax.experimental import pallas as pl
from jax.experimental.pallas import tpu as pltpu


def _round_up(x, m):
    return ((x + m - 1) // m) * m


# ---------------- Fused kernel: tap synthesis + in-VMEM halo + zero-phase conv -------------
def _make_geq_kernel(TR, L, K, N, OFF, W):
    base = OFF - (K - 1)  # static lane offset of tap-0 window inside the padded scratch

    def kernel(logmag_ref, basis_ref, x_ref, out_ref, xpad_ref, taps_ref):
        # 1) FIR synthesis (fused): basis is already windowed AND time-reversed, so the
        #    matmul emits the reversed taps directly. Keep f32 / HIGHEST for tolerance.
        mag = jnp.exp(logmag_ref[...])                                   # (TR, K)
        taps_ref[...] = jnp.dot(mag, basis_ref[...],
                                precision=jax.lax.Precision.HIGHEST,
                                preferred_element_type=jnp.float32)       # (TR, N)

        # 2) Halo handled in VMEM (no HBM pad): zero the scratch, drop the signal block at a
        #    lane-aligned offset OFF so all ref stores stay aligned.
        xpad_ref[...] = jnp.zeros((TR, W), jnp.float32)
        xpad_ref[:, OFF:OFF + L] = x_ref[...]

        # 3) Zero-phase conv: y[:, l] = sum_j taps_rev[:, j] * xpad[:, base + j + l].
        #    N = 2K-1 is small -> static unroll; taps broadcast per-row from the VMEM table.
        acc = jnp.zeros((TR, L), jnp.float32)
        for j in range(N):
            acc = acc + taps_ref[:, j:j + 1] * xpad_ref[:, base + j: base + j + L]
        out_ref[...] = acc

    return kernel


# ---------------- Wrapper: GraphicEqualizer.forward (FSM-style zero-phase FIR path) --------
def graphic_equalizer_forward(input_signals, log_gains):
    B, C, L = input_signals.shape
    _, K = log_gains.shape
    N = 2 * K - 1                                                        # odd FIR length

    # Constant synthesis matrix: irfft + roll(K-1) + periodic-Hann window + time reversal
    # all folded into one (K, N) matrix (built once per jit trace; tiny).
    n = jnp.arange(N, dtype=jnp.float32)
    k = jnp.arange(K, dtype=jnp.float32)
    coeff = jnp.where(k == 0, 1.0, 2.0)[:, None]                         # (K, 1)
    basis = coeff * jnp.cos(2.0 * jnp.pi * k[:, None]
                            * (n[None, :] - (K - 1)) / N) / N            # (K, N)
    window = 0.5 * (1.0 - jnp.cos(2.0 * jnp.pi * n / N))                 # torch.hann_window default
    basis_rev = jnp.flip(basis * window[None, :], axis=1)                # reversed + windowed (K, N)

    # Collapse (B, C) onto sublanes: rows share taps within a batch, so expand params per row.
    R = B * C
    x_rows = input_signals.reshape(R, L).astype(jnp.float32)
    logmag_rows = jnp.repeat(log_gains.astype(jnp.float32), C, axis=0)   # (R, K), ~bytes

    R_pad = _round_up(R, 8)
    if R_pad != R:
        x_rows = jnp.pad(x_rows, ((0, R_pad - R), (0, 0)))
        logmag_rows = jnp.pad(logmag_rows, ((0, R_pad - R), (0, 0)))

    if R_pad <= 256:
        TR = R_pad
    elif R_pad % 256 == 0:
        TR = 256
    else:
        TR = 8

    OFF = 128                                                            # aligned left halo (>= K-1)
    W = OFF + _round_up(L + K - 1, 128)                                  # padded-scratch lane width
    grid = (R_pad // TR,)

    out_rows = pl.pallas_call(
        _make_geq_kernel(TR, L, K, N, OFF, W),
        out_shape=jax.ShapeDtypeStruct((R_pad, L), jnp.float32),
        grid=grid,
        in_specs=[
            pl.BlockSpec((TR, K), lambda i: (i, 0)),                     # per-row log magnitudes
            pl.BlockSpec((K, N), lambda i: (0, 0)),                      # constant synthesis basis
            pl.BlockSpec((TR, L), lambda i: (i, 0)),                     # signal rows, L on lanes
        ],
        out_specs=pl.BlockSpec((TR, L), lambda i: (i, 0)),
        scratch_shapes=[
            pltpu.VMEM((TR, W), jnp.float32),                            # zero-padded signal (halo)
            pltpu.VMEM((TR, N), jnp.float32),                            # per-row reversed taps
        ],
        compiler_params=pltpu.CompilerParams(dimension_semantics=("parallel",)),
    )(logmag_rows, basis_rev, x_rows)

    return out_rows[:R].reshape(B, C, L)


# ---------------- Pure-JAX reference (mirrors the torch FFT-based semantics) ---------------
def reference(input_signals, log_gains):
    B, C, L = input_signals.shape
    _, K = log_gains.shape
    N = 2 * K - 1
    n = jnp.arange(N, dtype=jnp.float32)
    window = 0.5 * (1.0 - jnp.cos(2.0 * jnp.pi * n / N))
    ir = jnp.fft.irfft(jnp.exp(log_gains), n=N, axis=-1)
    ir = jnp.roll(ir, K - 1, axis=-1)
    fir = ir * window[None, :]
    Lfull = L + N - 1
    X = jnp.fft.rfft(input_signals, n=Lfull, axis=-1)
    Hf = jnp.fft.rfft(fir, n=Lfull, axis=-1)[:, None, :]
    y = jnp.fft.irfft(X * Hf, n=Lfull, axis=-1)
    return y[..., K - 1:K - 1 + L]                                       # zero-phase crop


if __name__ == "__main__":
    B, C, L, K = 2, 4, 128, 16
    key = jax.random.PRNGKey(0)
    k1, k2 = jax.random.split(key)
    x = jax.random.normal(k1, (B, C, L), dtype=jnp.float32)
    log_gains = jax.random.normal(k2, (B, K), dtype=jnp.float32)         # synthetic learnable params

    out = jax.jit(graphic_equalizer_forward)(x, log_gains)
    out = jax.block_until_ready(out)

    ref = reference(x, log_gains)
    assert out.shape == (B, C, L)
    err = float(jnp.max(jnp.abs(out - ref)))
    assert jnp.allclose(out, ref, atol=2e-3, rtol=2e-3), f"max abs err = {err}"
    print("KERNEL_OK")
</pallas_src>

<mosaic_0001>
module attributes {stable_mosaic.version = 11 : i64} {
  func.func @kernel(%arg0: i32, %arg1: memref<8x16xf32, #tpu.memory_space<vmem>>, %arg2: memref<16x31xf32, #tpu.memory_space<vmem>>, %arg3: memref<8x128xf32, #tpu.memory_space<vmem>>, %arg4: memref<8x128xf32, #tpu.memory_space<vmem>>, %arg5: memref<8x384xf32, #tpu.memory_space<vmem>>, %arg6: memref<8x31xf32, #tpu.memory_space<vmem>>) attributes {dimension_semantics = [#tpu.dimension_semantics<parallel>], iteration_bounds = array<i64: 1>, scalar_prefetch = 0 : i64, scratch_operands = 2 : i64, tpu.core_type = #tpu.core_type<tc>, window_params = [{transform_indices = @transform_0, window_bounds = array<i64: 8, 16>}, {pipeline_mode = #tpu.pipeline_mode<synchronous>, transform_indices = @transform_1, window_bounds = array<i64: 16, 31>}, {transform_indices = @transform_2, window_bounds = array<i64: 8, 128>}, {transform_indices = @transform_3, window_bounds = array<i64: 8, 128>}]} {
    %c0 = arith.constant 0 : index
    %c0_0 = arith.constant 0 : index
    %0 = vector.load %arg1[%c0, %c0_0] : memref<8x16xf32, #tpu.memory_space<vmem>>, vector<8x16xf32>
    %1 = math.exp %0 : vector<8x16xf32>
    %c0_1 = arith.constant 0 : index
    %c0_2 = arith.constant 0 : index
    %2 = vector.load %arg2[%c0_1, %c0_2] : memref<16x31xf32, #tpu.memory_space<vmem>>, vector<16x31xf32>
    %cst = arith.constant dense<0.000000e+00> : vector<8x31xf32>
    %3 = tpu.matmul %1, %2, %cst {dimension_numbers = #tpu.dot_dimension_numbers<[1], [0], [0], [1], [0, 0, 1, 1], [], []>, precision = #tpu.contract_precision<fp32>} : vector<8x16xf32>, vector<16x31xf32>, vector<8x31xf32> -> vector<8x31xf32>
    %c0_3 = arith.constant 0 : index
    %c0_4 = arith.constant 0 : index
    %4 = vector.load %arg6[%c0_3, %c0_4] : memref<8x31xf32, #tpu.memory_space<vmem>>, vector<8x31xf32>
    tpu.vector_store %arg6[%c0_3, %c0_4], %3 {strides = array<i32>} : memref<8x31xf32, #tpu.memory_space<vmem>>, vector<8x31xf32>,
    %cst_5 = arith.constant 0.000000e+00 : f32
    %5 = vector.broadcast %cst_5 : f32 to vector<8x384xf32>
    %c0_6 = arith.constant 0 : index
    %c0_7 = arith.constant 0 : index
    %6 = vector.load %arg5[%c0_6, %c0_7] : memref<8x384xf32, #tpu.memory_space<vmem>>, vector<8x384xf32>
    tpu.vector_store %arg5[%c0_6, %c0_7], %5 {strides = array<i32>} : memref<8x384xf32, #tpu.memory_space<vmem>>, vector<8x384xf32>,
    %c0_8 = arith.constant 0 : index
    %c0_9 = arith.constant 0 : index
    %7 = vector.load %arg3[%c0_8, %c0_9] : memref<8x128xf32, #tpu.memory_space<vmem>>, vector<8x128xf32>
    %c0_10 = arith.constant 0 : index
    %c128 = arith.constant 128 : index
    %8 = vector.load %arg5[%c0_10, %c128] : memref<8x384xf32, #tpu.memory_space<vmem>>, vector<8x128xf32>
    tpu.vector_store %arg5[%c0_10, %c128], %7 {strides = array<i32>} : memref<8x384xf32, #tpu.memory_space<vmem>>, vector<8x128xf32>,
    %cst_11 = arith.constant 0.000000e+00 : f32
    %9 = vector.broadcast %cst_11 : f32 to vector<8x128xf32>
    %c0_12 = arith.constant 0 : index
    %c0_13 = arith.constant 0 : index
    %10 = vector.load %arg6[%c0_12, %c0_13] : memref<8x31xf32, #tpu.memory_space<vmem>>, vector<8x1xf32>
    %c0_14 = arith.constant 0 : index
    %c113 = arith.constant 113 : index
    %11 = vector.load %arg5[%c0_14, %c113] : memref<8x384xf32, #tpu.memory_space<vmem>>, vector<8x128xf32>
    %12 = vector.broadcast %10 : vector<8x1xf32> to vector<8x128xf32>
    %13 = arith.mulf %12, %11 : vector<8x128xf32>
    %14 = arith.addf %9, %13 : vector<8x128xf32>
    %c0_15 = arith.constant 0 : index
    %c1 = arith.constant 1 : index
    %15 = vector.load %arg6[%c0_15, %c1] : memref<8x31xf32, #tpu.memory_space<vmem>>, vector<8x1xf32>
    %c0_16 = arith.constant 0 : index
    %c114 = arith.constant 114 : index
    %16 = vector.load %arg5[%c0_16, %c114] : memref<8x384xf32, #tpu.memory_space<vmem>>, vector<8x128xf32>
    %17 = vector.broadcast %15 : vector<8x1xf32> to vector<8x128xf32>
    %18 = arith.mulf %17, %16 : vector<8x128xf32>
    %19 = arith.addf %14, %18 : vector<8x128xf32>
    %c0_17 = arith.constant 0 : index
    %c2 = arith.constant 2 : index
    %20 = vector.load %arg6[%c0_17, %c2] : memref<8x31xf32, #tpu.memory_space<vmem>>, vector<8x1xf32>
    %c0_18 = arith.constant 0 : index
    %c115 = arith.constant 115 : index
    %21 = vector.load %arg5[%c0_18, %c115] : memref<8x384xf32, #tpu.memory_space<vmem>>, vector<8x128xf32>
    %22 = vector.broadcast %20 : vector<8x1xf32> to vector<8x128xf32>
    %23 = arith.mulf %22, %21 : vector<8x128xf32>
    %24 = arith.addf %19, %23 : vector<8x128xf32>
    %c0_19 = arith.constant 0 : index
    %c3 = arith.constant 3 : index
    %25 = vector.load %arg6[%c0_19, %c3] : memref<8x31xf32, #tpu.memory_space<vmem>>, vector<8x1xf32>
    %c0_20 = arith.constant 0 : index
    %c116 = arith.constant 116 : index
    %26 = vector.load %arg5[%c0_20, %c116] : memref<8x384xf32, #tpu.memory_space<vmem>>, vector<8x128xf32>
    %27 = vector.broadcast %25 : vector<8x1xf32> to vector<8x128xf32>
    %28 = arith.mulf %27, %26 : vector<8x128xf32>
    %29 = arith.addf %24, %28 : vector<8x128xf32>
    %c0_21 = arith.constant 0 : index
    %c4 = arith.constant 4 : index
    %30 = vector.load %arg6[%c0_21, %c4] : memref<8x31xf32, #tpu.memory_space<vmem>>, vector<8x1xf32>
    %c0_22 = arith.constant 0 : index
    %c117 = arith.constant 117 : index
    %31 = vector.load %arg5[%c0_22, %c117] : memref<8x384xf32, #tpu.memory_space<vmem>>, vector<8x128xf32>
    %32 = vector.broadcast %30 : vector<8x1xf32> to vector<8x128xf32>
    %33 = arith.mulf %32, %31 : vector<8x128xf32>
    %34 = arith.addf %29, %33 : vector<8x128xf32>
    %c0_23 = arith.constant 0 : index
    %c5 = arith.constant 5 : index
    %35 = vector.load %arg6[%c0_23, %c5] : memref<8x31xf32, #tpu.memory_space<vmem>>, vector<8x1xf32>
    %c0_24 = arith.constant 0 : index
    %c118 = arith.constant 118 : index
    %36 = vector.load %arg5[%c0_24, %c118] : memref<8x384xf32, #tpu.memory_space<vmem>>, vector<8x128xf32>
    %37 = vector.broadcast %35 : vector<8x1xf32> to vector<8x128xf32>
    %38 = arith.mulf %37, %36 : vector<8x128xf32>
    %39 = arith.addf %34, %38 : vector<8x128xf32>
    %c0_25 = arith.constant 0 : index
    %c6 = arith.constant 6 : index
    %40 = vector.load %arg6[%c0_25, %c6] : memref<8x31xf32, #tpu.memory_space<vmem>>, vector<8x1xf32>
    %c0_26 = arith.constant 0 : index
    %c119 = arith.constant 119 : index
    %41 = vector.load %arg5[%c0_26, %c119] : memref<8x384xf32, #tpu.memory_space<vmem>>, vector<8x128xf32>
    %42 = vector.broadcast %40 : vector<8x1xf32> to vector<8x128xf32>
    %43 = arith.mulf %42, %41 : vector<8x128xf32>
    %44 = arith.addf %39, %43 : vector<8x128xf32>
    %c0_27 = arith.constant 0 : index
    %c7 = arith.constant 7 : index
    %45 = vector.load %arg6[%c0_27, %c7] : memref<8x31xf32, #tpu.memory_space<vmem>>, vector<8x1xf32>
    %c0_28 = arith.constant 0 : index
    %c120 = arith.constant 120 : index
    %46 = vector.load %arg5[%c0_28, %c120] : memref<8x384xf32, #tpu.memory_space<vmem>>, vector<8x128xf32>
    %47 = vector.broadcast %45 : vector<8x1xf32> to vector<8x128xf32>
    %48 = arith.mulf %47, %46 : vector<8x128xf32>
    %49 = arith.addf %44, %48 : vector<8x128xf32>
    %c0_29 = arith.constant 0 : index
    %c8 = arith.constant 8 : index
    %50 = vector.load %arg6[%c0_29, %c8] : memref<8x31xf32, #tpu.memory_space<vmem>>, vector<8x1xf32>
    %c0_30 = arith.constant 0 : index
    %c121 = arith.constant 121 : index
    %51 = vector.load %arg5[%c0_30, %c121] : memref<8x384xf32, #tpu.memory_space<vmem>>, vector<8x128xf32>
    %52 = vector.broadcast %50 : vector<8x1xf32> to vector<8x128xf32>
    %53 = arith.mulf %52, %51 : vector<8x128xf32>
    %54 = arith.addf %49, %53 : vector<8x128xf32>
    %c0_31 = arith.constant 0 : index
    %c9 = arith.constant 9 : index
    %55 = vector.load %arg6[%c0_31, %c9] : memref<8x31xf32, #tpu.memory_space<vmem>>, vector<8x1xf32>
    %c0_32 = arith.constant 0 : index
    %c122 = arith.constant 122 : index
    %56 = vector.load %arg5[%c0_32, %c122] : memref<8x384xf32, #tpu.memory_space<vmem>>, vector<8x128xf32>
    %57 = vector.broadcast %55 : vector<8x1xf32> to vector<8x128xf32>
    %58 = arith.mulf %57, %56 : vector<8x128xf32>
    %59 = arith.addf %54, %58 : vector<8x128xf32>
    %c0_33 = arith.constant 0 : index
    %c10 = arith.constant 10 : index
    %60 = vector.load %arg6[%c0_33, %c10] : memref<8x31xf32, #tpu.memory_space<vmem>>, vector<8x1xf32>
    %c0_34 = arith.constant 0 : index
    %c123 = arith.constant 123 : index
    %61 = vector.load %arg5[%c0_34, %c123] : memref<8x384xf32, #tpu.memory_space<vmem>>, vector<8x128xf32>
    %62 = vector.broadcast %60 : vector<8x1xf32> to vector<8x128xf32>
    %63 = arith.mulf %62, %61 : vector<8x128xf32>
    %64 = arith.addf %59, %63 : vector<8x128xf32>
    %c0_35 = arith.constant 0 : index
    %c11 = arith.constant 11 : index
    %65 = vector.load %arg6[%c0_35, %c11] : memref<8x31xf32, #tpu.memory_space<vmem>>, vector<8x1xf32>
    %c0_36 = arith.constant 0 : index
    %c124 = arith.constant 124 : index
    %66 = vector.load %arg5[%c0_36, %c124] : memref<8x384xf32, #tpu.memory_space<vmem>>, vector<8x128xf32>
    %67 = vector.broadcast %65 : vector<8x1xf32> to vector<8x128xf32>
    %68 = arith.mulf %67, %66 : vector<8x128xf32>
    %69 = arith.addf %64, %68 : vector<8x128xf32>
    %c0_37 = arith.constant 0 : index
    %c12 = arith.constant 12 : index
    %70 = vector.load %arg6[%c0_37, %c12] : memref<8x31xf32, #tpu.memory_space<vmem>>, vector<8x1xf32>
    %c0_38 = arith.constant 0 : index
    %c125 = arith.constant 125 : index
    %71 = vector.load %arg5[%c0_38, %c125] : memref<8x384xf32, #tpu.memory_space<vmem>>, vector<8x128xf32>
    %72 = vector.broadcast %70 : vector<8x1xf32> to vector<8x128xf32>
    %73 = arith.mulf %72, %71 : vector<8x128xf32>
    %74 = arith.addf %69, %73 : vector<8x128xf32>
    %c0_39 = arith.constant 0 : index
    %c13 = arith.constant 13 : index
    %75 = vector.load %arg6[%c0_39, %c13] : memref<8x31xf32, #tpu.memory_space<vmem>>, vector<8x1xf32>
    %c0_40 = arith.constant 0 : index
    %c126 = arith.constant 126 : index
    %76 = vector.load %arg5[%c0_40, %c126] : memref<8x384xf32, #tpu.memory_space<vmem>>, vector<8x128xf32>
    %77 = vector.broadcast %75 : vector<8x1xf32> to vector<8x128xf32>
    %78 = arith.mulf %77, %76 : vector<8x128xf32>
    %79 = arith.addf %74, %78 : vector<8x128xf32>
    %c0_41 = arith.constant 0 : index
    %c14 = arith.constant 14 : index
    %80 = vector.load %arg6[%c0_41, %c14] : memref<8x31xf32, #tpu.memory_space<vmem>>, vector<8x1xf32>
    %c0_42 = arith.constant 0 : index
    %c127 = arith.constant 127 : index
    %81 = vector.load %arg5[%c0_42, %c127] : memref<8x384xf32, #tpu.memory_space<vmem>>, vector<8x128xf32>
    %82 = vector.broadcast %80 : vector<8x1xf32> to vector<8x128xf32>
    %83 = arith.mulf %82, %81 : vector<8x128xf32>
    %84 = arith.addf %79, %83 : vector<8x128xf32>
    %c0_43 = arith.constant 0 : index
    %c15 = arith.constant 15 : index
    %85 = vector.load %arg6[%c0_43, %c15] : memref<8x31xf32, #tpu.memory_space<vmem>>, vector<8x1xf32>
    %c0_44 = arith.constant 0 : index
    %c128_45 = arith.constant 128 : index
    %86 = vector.load %arg5[%c0_44, %c128_45] : memref<8x384xf32, #tpu.memory_space<vmem>>, vector<8x128xf32>
    %87 = vector.broadcast %85 : vector<8x1xf32> to vector<8x128xf32>
    %88 = arith.mulf %87, %86 : vector<8x128xf32>
    %89 = arith.addf %84, %88 : vector<8x128xf32>
    %c0_46 = arith.constant 0 : index
    %c16 = arith.constant 16 : index
    %90 = vector.load %arg6[%c0_46, %c16] : memref<8x31xf32, #tpu.memory_space<vmem>>, vector<8x1xf32>
    %c0_47 = arith.constant 0 : index
    %c129 = arith.constant 129 : index
    %91 = vector.load %arg5[%c0_47, %c129] : memref<8x384xf32, #tpu.memory_space<vmem>>, vector<8x128xf32>
    %92 = vector.broadcast %90 : vector<8x1xf32> to vector<8x128xf32>
    %93 = arith.mulf %92, %91 : vector<8x128xf32>
    %94 = arith.addf %89, %93 : vector<8x128xf32>
    %c0_48 = arith.constant 0 : index
    %c17 = arith.constant 17 : index
    %95 = vector.load %arg6[%c0_48, %c17] : memref<8x31xf32, #tpu.memory_space<vmem>>, vector<8x1xf32>
    %c0_49 = arith.constant 0 : index
    %c130 = arith.constant 130 : index
    %96 = vector.load %arg5[%c0_49, %c130] : memref<8x384xf32, #tpu.memory_space<vmem>>, vector<8x128xf32>
    %97 = vector.broadcast %95 : vector<8x1xf32> to vector<8x128xf32>
    %98 = arith.mulf %97, %96 : vector<8x128xf32>
    %99 = arith.addf %94, %98 : vector<8x128xf32>
    %c0_50 = arith.constant 0 : index
    %c18 = arith.constant 18 : index
    %100 = vector.load %arg6[%c0_50, %c18] : memref<8x31xf32, #tpu.memory_space<vmem>>, vector<8x1xf32>
    %c0_51 = arith.constant 0 : index
    %c131 = arith.constant 131 : index
    %101 = vector.load %arg5[%c0_51, %c131] : memref<8x384xf32, #tpu.memory_space<vmem>>, vector<8x128xf32>
    %102 = vector.broadcast %100 : vector<8x1xf32> to vector<8x128xf32>
    %103 = arith.mulf %102, %101 : vector<8x128xf32>
    %104 = arith.addf %99, %103 : vector<8x128xf32>
    %c0_52 = arith.constant 0 : index
    %c19 = arith.constant 19 : index
    %105 = vector.load %arg6[%c0_52, %c19] : memref<8x31xf32, #tpu.memory_space<vmem>>, vector<8x1xf32>
    %c0_53 = arith.constant 0 : index
    %c132 = arith.constant 132 : index
    %106 = vector.load %arg5[%c0_53, %c132] : memref<8x384xf32, #tpu.memory_space<vmem>>, vector<8x128xf32>
    %107 = vector.broadcast %105 : vector<8x1xf32> to vector<8x128xf32>
    %108 = arith.mulf %107, %106 : vector<8x128xf32>
    %109 = arith.addf %104, %108 : vector<8x128xf32>
    %c0_54 = arith.constant 0 : index
    %c20 = arith.constant 20 : index
    %110 = vector.load %arg6[%c0_54, %c20] : memref<8x31xf32, #tpu.memory_space<vmem>>, vector<8x1xf32>
    %c0_55 = arith.constant 0 : index
    %c133 = arith.constant 133 : index
    %111 = vector.load %arg5[%c0_55, %c133] : memref<8x384xf32, #tpu.memory_space<vmem>>, vector<8x128xf32>
    %112 = vector.broadcast %110 : vector<8x1xf32> to vector<8x128xf32>
    %113 = arith.mulf %112, %111 : vector<8x128xf32>
    %114 = arith.addf %109, %113 : vector<8x128xf32>
    %c0_56 = arith.constant 0 : index
    %c21 = arith.constant 21 : index
    %115 = vector.load %arg6[%c0_56, %c21] : memref<8x31xf32, #tpu.memory_space<vmem>>, vector<8x1xf32>
    %c0_57 = arith.constant 0 : index
    %c134 = arith.constant 134 : index
    %116 = vector.load %arg5[%c0_57, %c134] : memref<8x384xf32, #tpu.memory_space<vmem>>, vector<8x128xf32>
    %117 = vector.broadcast %115 : vector<8x1xf32> to vector<8x128xf32>
    %118 = arith.mulf %117, %116 : vector<8x128xf32>
    %119 = arith.addf %114, %118 : vector<8x128xf32>
    %c0_58 = arith.constant 0 : index
    %c22 = arith.constant 22 : index
    %120 = vector.load %arg6[%c0_58, %c22] : memref<8x31xf32, #tpu.memory_space<vmem>>, vector<8x1xf32>
    %c0_59 = arith.constant 0 : index
    %c135 = arith.constant 135 : index
    %121 = vector.load %arg5[%c0_59, %c135] : memref<8x384xf32, #tpu.memory_space<vmem>>, vector<8x128xf32>
    %122 = vector.broadcast %120 : vector<8x1xf32> to vector<8x128xf32>
    %123 = arith.mulf %122, %121 : vector<8x128xf32>
    %124 = arith.addf %119, %123 : vector<8x128xf32>
    %c0_60 = arith.constant 0 : index
    %c23 = arith.constant 23 : index
    %125 = vector.load %arg6[%c0_60, %c23] : memref<8x31xf32, #tpu.memory_space<vmem>>, vector<8x1xf32>
    %c0_61 = arith.constant 0 : index
    %c136 = arith.constant 136 : index
    %126 = vector.load %arg5[%c0_61, %c136] : memref<8x384xf32, #tpu.memory_space<vmem>>, vector<8x128xf32>
    %127 = vector.broadcast %125 : vector<8x1xf32> to vector<8x128xf32>
    %128 = arith.mulf %127, %126 : vector<8x128xf32>
    %129 = arith.addf %124, %128 : vector<8x128xf32>
    %c0_62 = arith.constant 0 : index
    %c24 = arith.constant 24 : index
    %130 = vector.load %arg6[%c0_62, %c24] : memref<8x31xf32, #tpu.memory_space<vmem>>, vector<8x1xf32>
    %c0_63 = arith.constant 0 : index
    %c137 = arith.constant 137 : index
    %131 = vector.load %arg5[%c0_63, %c137] : memref<8x384xf32, #tpu.memory_space<vmem>>, vector<8x128xf32>
    %132 = vector.broadcast %130 : vector<8x1xf32> to vector<8x128xf32>
    %133 = arith.mulf %132, %131 : vector<8x128xf32>
    %134 = arith.addf %129, %133 : vector<8x128xf32>
    %c0_64 = arith.constant 0 : index
    %c25 = arith.constant 25 : index
    %135 = vector.load %arg6[%c0_64, %c25] : memref<8x31xf32, #tpu.memory_space<vmem>>, vector<8x1xf32>
    %c0_65 = arith.constant 0 : index
    %c138 = arith.constant 138 : index
    %136 = vector.load %arg5[%c0_65, %c138] : memref<8x384xf32, #tpu.memory_space<vmem>>, vector<8x128xf32>
    %137 = vector.broadcast %135 : vector<8x1xf32> to vector<8x128xf32>
    %138 = arith.mulf %137, %136 : vector<8x128xf32>
    %139 = arith.addf %134, %138 : vector<8x128xf32>
    %c0_66 = arith.constant 0 : index
    %c26 = arith.constant 26 : index
    %140 = vector.load %arg6[%c0_66, %c26] : memref<8x31xf32, #tpu.memory_space<vmem>>, vector<8x1xf32>
    %c0_67 = arith.constant 0 : index
    %c139 = arith.constant 139 : index
    %141 = vector.load %arg5[%c0_67, %c139] : memref<8x384xf32, #tpu.memory_space<vmem>>, vector<8x128xf32>
    %142 = vector.broadcast %140 : vector<8x1xf32> to vector<8x128xf32>
    %143 = arith.mulf %142, %141 : vector<8x128xf32>
    %144 = arith.addf %139, %143 : vector<8x128xf32>
    %c0_68 = arith.constant 0 : index
    %c27 = arith.constant 27 : index
    %145 = vector.load %arg6[%c0_68, %c27] : memref<8x31xf32, #tpu.memory_space<vmem>>, vector<8x1xf32>
    %c0_69 = arith.constant 0 : index
    %c140 = arith.constant 140 : index
    %146 = vector.load %arg5[%c0_69, %c140] : memref<8x384xf32, #tpu.memory_space<vmem>>, vector<8x128xf32>
    %147 = vector.broadcast %145 : vector<8x1xf32> to vector<8x128xf32>
    %148 = arith.mulf %147, %146 : vector<8x128xf32>
    %149 = arith.addf %144, %148 : vector<8x128xf32>
    %c0_70 = arith.constant 0 : index
    %c28 = arith.constant 28 : index
    %150 = vector.load %arg6[%c0_70, %c28] : memref<8x31xf32, #tpu.memory_space<vmem>>, vector<8x1xf32>
    %c0_71 = arith.constant 0 : index
    %c141 = arith.constant 141 : index
    %151 = vector.load %arg5[%c0_71, %c141] : memref<8x384xf32, #tpu.memory_space<vmem>>, vector<8x128xf32>
    %152 = vector.broadcast %150 : vector<8x1xf32> to vector<8x128xf32>
    %153 = arith.mulf %152, %151 : vector<8x128xf32>
    %154 = arith.addf %149, %153 : vector<8x128xf32>
    %c0_72 = arith.constant 0 : index
    %c29 = arith.constant 29 : index
    %155 = vector.load %arg6[%c0_72, %c29] : memref<8x31xf32, #tpu.memory_space<vmem>>, vector<8x1xf32>
    %c0_73 = arith.constant 0 : index
    %c142 = arith.constant 142 : index
    %156 = vector.load %arg5[%c0_73, %c142] : memref<8x384xf32, #tpu.memory_space<vmem>>, vector<8x128xf32>
    %157 = vector.broadcast %155 : vector<8x1xf32> to vector<8x128xf32>
    %158 = arith.mulf %157, %156 : vector<8x128xf32>
    %159 = arith.addf %154, %158 : vector<8x128xf32>
    %c0_74 = arith.constant 0 : index
    %c30 = arith.constant 30 : index
    %160 = vector.load %arg6[%c0_74, %c30] : memref<8x31xf32, #tpu.memory_space<vmem>>, vector<8x1xf32>
    %c0_75 = arith.constant 0 : index
    %c143 = arith.constant 143 : index
    %161 = vector.load %arg5[%c0_75, %c143] : memref<8x384xf32, #tpu.memory_space<vmem>>, vector<8x128xf32>
    %162 = vector.broadcast %160 : vector<8x1xf32> to vector<8x128xf32>
    %163 = arith.mulf %162, %161 : vector<8x128xf32>
    %164 = arith.addf %159, %163 : vector<8x128xf32>
    %c0_76 = arith.constant 0 : index
    %c0_77 = arith.constant 0 : index
    %165 = vector.load %arg4[%c0_76, %c0_77] : memref<8x128xf32, #tpu.memory_space<vmem>>, vector<8x128xf32>
    tpu.vector_store %arg4[%c0_76, %c0_77], %164 {strides = array<i32>} : memref<8x128xf32, #tpu.memory_space<vmem>>, vector<8x128xf32>,
    return
  }
  func.func @transform_0(%arg0: i32) -> (i32, i32) {
    %c0_i32 = arith.constant 0 : i32
    %c0_i32_0 = arith.constant 0 : i32
    return %arg0, %c0_i32 : i32, i32
  }
  func.func @transform_1(%arg0: i32) -> (i32, i32) {
    %c0_i32 = arith.constant 0 : i32
    %c0_i32_0 = arith.constant 0 : i32
    %c0_i32_1 = arith.constant 0 : i32
    return %c0_i32, %c0_i32_0 : i32, i32
  }
  func.func @transform_2(%arg0: i32) -> (i32, i32) {
    %c0_i32 = arith.constant 0 : i32
    %c0_i32_0 = arith.constant 0 : i32
    return %arg0, %c0_i32 : i32, i32
  }
  func.func @transform_3(%arg0: i32) -> (i32, i32) {
    %c0_i32 = arith.constant 0 : i32
    %c0_i32_0 = arith.constant 0 : i32
    return %arg0, %c0_i32 : i32, i32
  }
}

</mosaic_0001>

<bundles_post_ra>
// kernel: graphic_equalizer_forward.1
= control target key start
LH: loop header
LB: loop body
LE: loop exit
PB: predicated region body
PF: predicated region fallthrough
CT: control target
= control target key end

     0   :  { %v1271_v3 = vmov 0.0|0.0   ;;  %vm1272_vm0 = vmmov 0   ;;  %v1273_v7 = vmov 0.0   ;;  %s1497_s0 = inlined_call_operand.vmem [shape: f32[8,16], index: 0, kind: input, shape index: {}]   ;;  %s1498_s1 = inlined_call_operand.vmem [shape: f32[16,31], index: 1, kind: input, shape index: {}]   ;;  %s1499_s2 = inlined_call_operand.vmem [shape: f32[8,128], index: 2, kind: input, shape index: {}]   ;;  %s1500_s3 = inlined_call_operand.hbm [shape: f32[8,128], index: 3, kind: output, shape index: {}]  }
   0x1   :  { %v18_v0 = vld [vmem:[%s1498_s1] sm:$0xff]  ;;  %v19_v1 = vld [vmem:[%s1498_s1 + $0x8] sm:$0xff]  ;;  %1130 = vmatprep.subr.bf16.mxu0 %v1271_v3  ;;  %1121 = vmatprep.subr.bf16.mxu1 %v1271_v3 }
   0x2   :  { %v15_v2 = vld [vmem:[%s1497_s0] sm:$0xff]  ;;  %v25_v4 = vand.u32 4294901760, %v18_v0  ;;  %v28_v5 = vand.u32 4294901760, %v19_v1  ;;  %1104 = vmatprep.mubr.msk.f32.mxu0 %vm1272_vm0, %v1273_v7  ;;  %1083 = vmatprep.mubr.msk.f32.mxu1 %vm1272_vm0, %v1273_v7 }
   0x3   :  { %v16_v6 = vmul.f32 1.442695, %v15_v2 }
   0x4   :  { %8 = vsyncpa [#allocation5], 0  ;;  %v1122_v8 = vpack.c.bf16 %v28_v5, %v25_v4  ;;  %v103_v9 = vsub.f32 %v18_v0, %v25_v4  ;;  %v110_v10 = vsub.f32 %v19_v1, %v28_v5  ;;  %vm20_vm1 = vcmask 130048   ;;  %v1408_v0 = vld [vmem:[%s1499_s2] sm:$0xff]  ;;  %s1305_s18 = smov 127   ;;  %s1306_s19 = smov 126  }
   0x5   :  { %1245 = vpow2.f32 %v16_v6  ;;  %v1274_v27 = vmov 3   ;;  %v1275_v28 = vmov 1   ;;  %vm483_vm2 = vcmask 252928   ;;  %s1307_s2 = smov 125   ;;  %s1308_s20 = smov 124  }
   0x6   :  { %1132 = vmatpush3.bf16.msra.mxu0 %v1122_v8  ;;  %1123 = vmatpush3.bf16.msra.mxu1 %v1122_v8  ;;  %v104_v11 = vand.u32 4294901760, %v103_v9  ;;  %v111_v12 = vand.u32 4294901760, %v110_v10  ;;  %v1128_v26 = vpack.c.bf16 %v110_v10, %v103_v9  ;;  %v1276_v35 = vmov 4   ;;  %s1309_s21 = smov 123   ;;  %s1310_s22 = smov 122  }
   0x7   :  { %1124 = vmatprep.subr.bf16.mxu1 %v1271_v3  ;;  %1133 = vmatprep.subr.bf16.mxu0 %v1271_v3  ;;  %v1277_v36 = vmov 2   ;;  %v1278_v37 = vmov 5   ;;  %v1279_v38 = vmov 6   ;;  %v1280_v39 = vmov 7   ;;  %s1311_s23 = smov 121   ;;  %s1312_s24 = smov 120  }
   0x8   :  { %v105_v15 = vsub.f32 %v103_v9, %v104_v11  ;;  %v112_v16 = vsub.f32 %v110_v10, %v111_v12  ;;  %v1134_v21 = vpack.c.bf16 %v111_v12, %v104_v11  ;;  %1216 = vset.pattern.permute.xlu1 %v1274_v27  ;;  %1214 = vset.pattern.permute.xlu0 %v1275_v28  ;;  %v1281_v40 = vmov 9   ;;  %s1313_s25 = smov 119   ;;  %s1314_s26 = smov 118  }
   0x9   :  { %v1282_v41 = vmov 8   ;;  %v1283_v42 = vmov 12   ;;  %v1284_v43 = vmov 10   ;;  %v1285_v44 = vmov 15   ;;  %s1315_s27 = smov 117   ;;  %s1316_s28 = smov 116  }
   0xa   :  { %v106_v19 = vand.u32 4294901760, %v105_v15  ;;  %v113_v20 = vand.u32 4294901760, %v112_v16  ;;  %v1286_v45 = vmov 11   ;;  %v1287_v46 = vmov 18   ;;  %s1317_s29 = smov 115   ;;  %s1318_s30 = smov 114  }
   0xb   :  { %v1288_v47 = vmov 13   ;;  %v1289_v48 = vmov 21   ;;  %v1290_v49 = vmov 14   ;;  %v1291_v50 = vmov 24   ;;  %s1319_s4 = smov 112   ;;  %s1320_s5 = smov 113  }
   0xc   :  { %v1125_v24 = vpack.c.bf16 %v113_v20, %v106_v19  ;;  %v1292_v51 = vmov 16   ;;  %v1293_v52 = vmov 27   ;;  %v1294_v53 = vmov 17   ;;  %s1321_s6 = smov 111   ;;  %s1322_s7 = smov 110  }
   0xd   :  { %v1295_v54 = vmov 30   ;;  %v1296_v55 = vmov 19   ;;  %v1297_v56 = vmov 20   ;;  %v1298_v57 = vmov 22   ;;  %s1323_s8 = smov 109   ;;  %s1324_s9 = smov 108  }
   0xe   :  { %v1299_v58 = vmov 23   ;;  %v1300_v59 = vmov 25   ;;  %v1301_v60 = vmov 26   ;;  %v1302_v61 = vmov 28   ;;  %s1325_s10 = smov 107   ;;  %s1326_s11 = smov 106  }
   0xf   :  { %v1246_v13 = vpop.eup %1245  ;;  %v1303_v62 = vmov 29   ;;  %v1304_v63 = vmov 0   ;;  %s1327_s12 = smov 105   ;;  %s1328_s13 = smov 104   ;;  %vm514_vm3 = vcmask 1039360   ;;  %vm532_vm4 = vcmask 1031168  }
  0x10   :  { %v22_v14 = vsel %vm20_vm1, %v1246_v13, 0  ;;  %s1329_s14 = smov 103   ;;  %s1330_s15 = smov 102   ;;  %vm550_vm5 = vcmask 1022976   ;;  %vm568_vm6 = vcmask 1014784   ;;  %vm586_vm7 = vcmask 1006592  }
  0x11   :  { %v91_v17 = vand.u32 4294901760, %v22_v14  ;;  %s1331_s16 = smov 101   ;;  %s1332_s17 = smov 100   ;;  %vm604_vm8 = vcmask 998400   ;;  %vm622_vm9 = vcmask 990208   ;;  %vm640_vm10 = vcmask 982016  }
  0x12   :  { %s1333_s0 = smov 99   ;;  %s1334_s1 = smov 98   ;;  %vm658_vm11 = vcmask 973824   ;;  %vm676_vm12 = vcmask 965632   ;;  %vm694_vm13 = vcmask 957440   ;;  %vm712_vm14 = vcmask 949248  }
  0x13   :  { %v92_v18 = vsub.f32 %v22_v14, %v91_v17  ;;  %vm730_vm15 = vcmask 941056   ;;  %vm779_vm1 = vcmask 916480  }
  0x15   :  { %v93_v22 = vand.u32 4294901760, %v92_v18 }
  0x17   :  { %1105 = vmatmul.mubr.f32.vlgmr.msra.gmra.mrb[0].mxu0 %v93_v22  ;;  %v94_v23 = vsub.f32 %v92_v18, %v93_v22 }
  0x18   :  { %1135 = vmatpush3.bf16.msra.mxu0 %v1134_v21  ;;  %1111 = vmatprep.mubr.msk.f32.mxu0 %vm1272_vm0, %v1273_v7 }
  0x19   :  { %v95_v25 = vand.u32 4294901760, %v94_v23  ;;  %1136 = vmatprep.subr.bf16.mxu0 %v1271_v3 }
  0x1b   :  { %1084 = vmatmul.mubr.f32.vlgmr.msra.gmra.mrb[0].mxu1 %v95_v25 }
  0x1c   :  { %1126 = vmatpush3.bf16.msra.mxu1 %v1125_v24  ;;  %1090 = vmatprep.mubr.msk.f32.mxu1 %vm1272_vm0, %v1273_v7 }
  0x1d   :  { %1127 = vmatprep.subr.bf16.mxu1 %v1271_v3 }
  0x1f   :  { %1112 = vmatmul.mubr.f32.vlgmr.msra.gmra.mrb[0].mxu0 %v91_v17 }
  0x20   :  { %1138 = vmatpush3.bf16.msra.mxu0 %v1122_v8  ;;  %1118 = vmatprep.mubr.msk.f32.mxu0 %vm1272_vm0, %v1273_v7 }
  0x23   :  { %1091 = vmatmul.mubr.f32.vlgmr.msra.gmra.mrb[0].mxu1 %v91_v17 }
  0x24   :  { %1129 = vmatpush3.bf16.msra.mxu1 %v1128_v26  ;;  %1097 = vmatprep.mubr.msk.f32.mxu1 %vm1272_vm0, %v1273_v7  ;;  %vm748_vm0 = vcmask 932864  }
  0x27   :  { %1119 = vmatmul.mubr.f32.vlgmr.msra.gmra.mrb[0].mxu0 %v91_v17 }
  0x2b   :  { %1098 = vmatmul.mubr.f32.vlgmr.msra.gmra.mrb[0].mxu1 %v92_v18 }
  0xfa   :  { %v479_v29 = vpop.f32.mrb[0].mxu0 }
  0xfb   :  { %v1120_v30 = vpop.f32.mrb[1].mxu0 }
  0xfe   :  { %v254_v31 = vpop.f32.mrb[0].mxu1 }
  0xff   :  { %v1139_v32 = vadd.f32 %v479_v29, %v254_v31  ;;  %v1099_v33 = vpop.f32.mrb[1].mxu1 }
 0x101   :  { %484 = vst.msk [vmem:[#allocation3] sm:$0xff] %vm483_vm2, %v1139_v32  ;;  %vm797_vm2 = vcmask 908288  }
 0x108   :  { %v1372_v34 = vld [vmem:[#allocation3] sm:$0xff] }
 0x109   :  { %539 = vperm.xlu1 %1216, %v1372_v34   ;;  %503 = vperm.xlu0 %1214, %v1372_v34  }
 0x10d   :  { %1217 = vset.pattern.permute.xlu1 %v1276_v35  ;;  %1215 = vset.pattern.permute.xlu0 %v1277_v36 }
 0x10e   :  { %557 = vperm.xlu1 %1217, %v1372_v34   ;;  %521 = vperm.xlu0 %1215, %v1372_v34  }
 0x112   :  { %1218 = vset.pattern.permute.xlu1 %v1278_v37  ;;  %1219 = vset.pattern.permute.xlu0 %v1279_v38 }
 0x113   :  { %575 = vperm.xlu1 %1218, %v1372_v34   ;;  %593 = vperm.xlu0 %1219, %v1372_v34  }
 0x117   :  { %1220 = vset.pattern.permute.xlu1 %v1280_v39  ;;  %1222 = vset.pattern.permute.xlu0 %v1281_v40 }
 0x118   :  { %611 = vperm.xlu1 %1220, %v1372_v34   ;;  %647 = vperm.xlu0 %1222, %v1372_v34  }
 0x11c   :  { %1221 = vset.pattern.permute.xlu1 %v1282_v41  ;;  %1225 = vset.pattern.permute.xlu0 %v1283_v42 }
 0x11d   :  { %629 = vperm.xlu1 %1221, %v1372_v34   ;;  %701 = vperm.xlu0 %1225, %v1372_v34  }
 0x121   :  { %1223 = vset.pattern.permute.xlu1 %v1284_v43  ;;  %1228 = vset.pattern.permute.xlu0 %v1285_v44 }
 0x122   :  { %665 = vperm.xlu1 %1223, %v1372_v34   ;;  %755 = vperm.xlu0 %1228, %v1372_v34  }
 0x126   :  { %1224 = vset.pattern.permute.xlu1 %v1286_v45  ;;  %1231 = vset.pattern.permute.xlu0 %v1287_v46 }
 0x127   :  { %683 = vperm.xlu1 %1224, %v1372_v34   ;;  %804 = vperm.xlu0 %1231, %v1372_v34  }
 0x12b   :  { %1226 = vset.pattern.permute.xlu1 %v1288_v47  ;;  %1234 = vset.pattern.permute.xlu0 %v1289_v48 }
 0x12c   :  { %719 = vperm.xlu1 %1226, %v1372_v34   ;;  %858 = vperm.xlu0 %1234, %v1372_v34  }
 0x130   :  { %1227 = vset.pattern.permute.xlu1 %v1290_v49  ;;  %1237 = vset.pattern.permute.xlu0 %v1291_v50 }
 0x131   :  { %737 = vperm.xlu1 %1227, %v1372_v34   ;;  %912 = vperm.xlu0 %1237, %v1372_v34  }
 0x135   :  { %1229 = vset.pattern.permute.xlu1 %v1292_v51  ;;  %1240 = vset.pattern.permute.xlu0 %v1293_v52 }
 0x136   :  { %768 = vperm.xlu1 %1229, %v1372_v34   ;;  %966 = vperm.xlu0 %1240, %v1372_v34  }
 0x13a   :  { %1230 = vset.pattern.permute.xlu1 %v1294_v53  ;;  %1243 = vset.pattern.permute.xlu0 %v1295_v54 }
 0x13b   :  { %786 = vperm.xlu1 %1230, %v1372_v34   ;;  %1020 = vperm.xlu0 %1243, %v1372_v34  }
 0x13f   :  { %1232 = vset.pattern.permute.xlu1 %v1296_v55 }
 0x140   :  { %822 = vperm.xlu1 %1232, %v1372_v34  }
 0x144   :  { %1233 = vset.pattern.permute.xlu1 %v1297_v56 }
 0x145   :  { %840 = vperm.xlu1 %1233, %v1372_v34  }
 0x149   :  { %1235 = vset.pattern.permute.xlu1 %v1298_v57 }
 0x14a   :  { %876 = vperm.xlu1 %1235, %v1372_v34  }
 0x14e   :  { %1236 = vset.pattern.permute.xlu1 %v1299_v58 }
 0x14f   :  { %894 = vperm.xlu1 %1236, %v1372_v34  }
 0x153   :  { %1238 = vset.pattern.permute.xlu1 %v1300_v59 }
 0x154   :  { %930 = vperm.xlu1 %1238, %v1372_v34  }
 0x158   :  { %1239 = vset.pattern.permute.xlu1 %v1301_v60 }
 0x159   :  { %948 = vperm.xlu1 %1239, %v1372_v34  }
 0x15d   :  { %1241 = vset.pattern.permute.xlu1 %v1302_v61 }
 0x15e   :  { %984 = vperm.xlu1 %1241, %v1372_v34  }
 0x162   :  { %1242 = vset.pattern.permute.xlu1 %v1303_v62 }
 0x163   :  { %1002 = vperm.xlu1 %1242, %v1372_v34  }
 0x167   :  { %1244 = vset.pattern.permute.xlu1 %v1304_v63 }
 0x168   :  { %495 = vperm.xlu1 %1244, %v1372_v34  }
 0x188   :  { %v540_v1 = vpop.permute.xlu1 %539  ;;  %v504_v2 = vpop.permute.xlu0 %503 }
 0x189   :  { %v506_v3 = vmul.f32 0.0, %v504_v2  ;;  %v507_v4 = vmul.f32 %v504_v2, %v1408_v0  ;;  %v542_v9 = vmul.f32 0.0, %v540_v1  ;;  %v543_v10 = vmul.f32 %v540_v1, %v1408_v0 }
 0x18b   :  { %510 = vrot.lane.b32.xlu1 %v506_v3, %s1305_s18  ;;  %512 = vrot.lane.b32.xlu0 %v507_v4, %s1305_s18  ;;  %s1335_s18 = smov 15  }
 0x18d   :  { %v558_v5 = vpop.permute.xlu1 %557  ;;  %v522_v6 = vpop.permute.xlu0 %521 }
 0x18e   :  { %v524_v7 = vmul.f32 0.0, %v522_v6  ;;  %v525_v8 = vmul.f32 %v522_v6, %v1408_v0  ;;  %v560_v12 = vmul.f32 0.0, %v558_v5  ;;  %v561_v13 = vmul.f32 %v558_v5, %v1408_v0 }
 0x190   :  { %528 = vrot.lane.b32.xlu1 %v524_v7, %s1306_s19  ;;  %530 = vrot.lane.b32.xlu0 %v525_v8, %s1306_s19  ;;  %s1336_s19 = smov [#allocation4]  }
 0x192   :  { %v576_v11 = vpop.permute.xlu1 %575  ;;  %v594_v17 = vpop.permute.xlu0 %593 }
 0x193   :  { %v578_v15 = vmul.f32 0.0, %v576_v11  ;;  %v579_v16 = vmul.f32 %v576_v11, %v1408_v0  ;;  %v596_v18 = vmul.f32 0.0, %v594_v17  ;;  %v597_v19 = vmul.f32 %v594_v17, %v1408_v0 }
 0x194   :  { %546 = vrot.lane.b32.xlu1 %v542_v9, %s1307_s2  ;;  %548 = vrot.lane.b32.xlu0 %v543_v10, %s1307_s2  ;;  %s1053_s2 = sshll.u32 %s1336_s19, 4  ;;  %s1054_s2 = int_to_ptr.vmem [resolvable:$true] %s1053_s2 }
 0x195   :  { %p1252_p1 = scmp.lt.s32.totalorder %s1054_s2, %s1054_s2 }
 0x197   :  { %v612_v14 = vpop.permute.xlu1 %611  ;;  %v648_v26 = vpop.permute.xlu0 %647 }
 0x198   :  { %564 = vrot.lane.b32.xlu1 %v560_v12, %s1308_s20  ;;  %566 = vrot.lane.b32.xlu0 %v561_v13, %s1308_s20  ;;  %v614_v21 = vmul.f32 0.0, %v612_v14  ;;  %v615_v22 = vmul.f32 %v612_v14, %v1408_v0  ;;  %v650_v27 = vmul.f32 0.0, %v648_v26  ;;  %v651_v28 = vmul.f32 %v648_v26, %v1408_v0  ;;  %s1247_s20 = scalar_lea.vmem %s1054_s2, 128 }
 0x199   :  { %p1248_p0 = scmp.ne.s32.totalorder %s1054_s2, %s1247_s20  ;;  %p1253_p2 = scmp.lt.s32.totalorder %s1247_s20, %s1247_s20 }
 0x19b   :  { %p1254_p3 = por %p1253_p2, %p1252_p1 }
 0x19c   :  { %582 = vrot.lane.b32.xlu1 %v578_v15, %s1309_s21  ;;  %584 = vrot.lane.b32.xlu0 %v579_v16, %s1309_s21  ;;  %v630_v20 = vpop.permute.xlu1 %629  ;;  %v702_v35 = vpop.permute.xlu0 %701 }
 0x19d   :  { %v632_v24 = vmul.f32 0.0, %v630_v20  ;;  %v633_v25 = vmul.f32 %v630_v20, %v1408_v0  ;;  %v704_v36 = vmul.f32 0.0, %v702_v35  ;;  %v705_v37 = vmul.f32 %v702_v35, %v1408_v0  ;;  %p1255_p4 = pnand %p1254_p3, %p1248_p0 }
 0x1a0   :  { %600 = vrot.lane.b32.xlu1 %v596_v18, %s1310_s22  ;;  %602 = vrot.lane.b32.xlu0 %v597_v19, %s1310_s22 }
 0x1a1   :  { %v666_v23 = vpop.permute.xlu1 %665  ;;  %v756_v44 = vpop.permute.xlu0 %755 }
 0x1a2   :  { %v668_v30 = vmul.f32 0.0, %v666_v23  ;;  %v669_v31 = vmul.f32 %v666_v23, %v1408_v0  ;;  %v758_v45 = vmul.f32 %v756_v44, %v1408_v0 }
 0x1a4   :  { %618 = vrot.lane.b32.xlu1 %v614_v21, %s1311_s23  ;;  %620 = vrot.lane.b32.xlu0 %v615_v22, %s1311_s23 }
 0x1a6   :  { %v684_v29 = vpop.permute.xlu1 %683  ;;  %v805_v50 = vpop.permute.xlu0 %804 }
 0x1a7   :  { %v686_v33 = vmul.f32 0.0, %v684_v29  ;;  %v687_v34 = vmul.f32 %v684_v29, %v1408_v0  ;;  %v807_v52 = vmul.f32 %v805_v50, %v1408_v0  ;;  %v808_v54 = vmul.f32 0.0, %v805_v50 }
 0x1a8   :  { %636 = vrot.lane.b32.xlu1 %v632_v24, %s1312_s24  ;;  %638 = vrot.lane.b32.xlu0 %v633_v25, %s1312_s24 }
 0x1ab   :  { %v720_v32 = vpop.permute.xlu1 %719  ;;  %v859_v59 = vpop.permute.xlu0 %858 }
 0x1ac   :  { %654 = vrot.lane.b32.xlu1 %v650_v27, %s1313_s25  ;;  %656 = vrot.lane.b32.xlu0 %v651_v28, %s1313_s25  ;;  %v722_v39 = vmul.f32 0.0, %v720_v32  ;;  %v723_v40 = vmul.f32 %v720_v32, %v1408_v0  ;;  %v861_v61 = vmul.f32 %v859_v59, %v1408_v0  ;;  %v862_v63 = vmul.f32 0.0, %v859_v59 }
 0x1b0   :  { %672 = vrot.lane.b32.xlu1 %v668_v30, %s1314_s26  ;;  %674 = vrot.lane.b32.xlu0 %v669_v31, %s1314_s26  ;;  %v738_v38 = vpop.permute.xlu1 %737  ;;  %v913_v5 = vpop.permute.xlu0 %912 }
 0x1b1   :  { %v740_v42 = vmul.f32 0.0, %v738_v38  ;;  %v741_v43 = vmul.f32 %v738_v38, %v1408_v0  ;;  %v915_v7 = vmul.f32 %v913_v5, %v1408_v0  ;;  %v916_v9 = vmul.f32 0.0, %v913_v5 }
 0x1b4   :  { %690 = vrot.lane.b32.xlu1 %v686_v33, %s1315_s27  ;;  %692 = vrot.lane.b32.xlu0 %v687_v34, %s1315_s27 }
 0x1b5   :  { %v769_v41 = vpop.permute.xlu1 %768  ;;  %v967_v14 = vpop.permute.xlu0 %966 }
 0x1b6   :  { %v771_v46 = vmul.f32 %v769_v41, %v1408_v0  ;;  %v772_v48 = vmul.f32 0.0, %v769_v41  ;;  %v969_v16 = vmul.f32 %v967_v14, %v1408_v0  ;;  %v970_v18 = vmul.f32 0.0, %v967_v14 }
 0x1b8   :  { %708 = vrot.lane.b32.xlu1 %v704_v36, %s1316_s28  ;;  %710 = vrot.lane.b32.xlu0 %v705_v37, %s1316_s28 }
 0x1ba   :  { %v787_v47 = vpop.permute.xlu1 %786  ;;  %v1021_v23 = vpop.permute.xlu0 %1020 }
 0x1bb   :  { %v789_v49 = vmul.f32 %v787_v47, %v1408_v0  ;;  %v790_v53 = vmul.f32 0.0, %v787_v47  ;;  %v1023_v25 = vmul.f32 %v1021_v23, %v1408_v0  ;;  %v1024_v29 = vmul.f32 0.0, %v1021_v23 }
 0x1bc   :  { %726 = vrot.lane.b32.xlu1 %v722_v39, %s1317_s29  ;;  %728 = vrot.lane.b32.xlu0 %v723_v40, %s1317_s29 }
 0x1bf   :  { %v823_v51 = vpop.permute.xlu1 %822 }
 0x1c0   :  { %744 = vrot.lane.b32.xlu1 %v740_v42, %s1318_s30  ;;  %746 = vrot.lane.b32.xlu0 %v741_v43, %s1318_s30  ;;  %v825_v55 = vmul.f32 %v823_v51, %v1408_v0  ;;  %v826_v57 = vmul.f32 0.0, %v823_v51 }
 0x1c4   :  { %775 = vrot.lane.b32.xlu0 %v771_v46, %s1319_s4  ;;  %760 = vrot.lane.b32.xlu1 %v758_v45, %s1320_s5  ;;  %v841_v56 = vpop.permute.xlu1 %840 }
 0x1c5   :  { %v843_v58 = vmul.f32 %v841_v56, %v1408_v0  ;;  %v844_v62 = vmul.f32 0.0, %v841_v56 }
 0x1c8   :  { %793 = vrot.lane.b32.xlu0 %v789_v49, %s1321_s6  ;;  %777 = vrot.lane.b32.xlu1 %v772_v48, %s1319_s4 }
 0x1c9   :  { %v877_v60 = vpop.permute.xlu1 %876 }
 0x1ca   :  { %v879_v1 = vmul.f32 %v877_v60, %v1408_v0  ;;  %v880_v3 = vmul.f32 0.0, %v877_v60 }
 0x1cc   :  { %795 = vrot.lane.b32.xlu1 %v790_v53, %s1321_s6  ;;  %811 = vrot.lane.b32.xlu0 %v807_v52, %s1322_s7 }
 0x1ce   :  { %v895_v2 = vpop.permute.xlu1 %894 }
 0x1cf   :  { %v897_v4 = vmul.f32 %v895_v2, %v1408_v0  ;;  %v898_v8 = vmul.f32 0.0, %v895_v2 }
 0x1d0   :  { %813 = vrot.lane.b32.xlu1 %v808_v54, %s1322_s7  ;;  %829 = vrot.lane.b32.xlu0 %v825_v55, %s1323_s8 }
 0x1d3   :  { %v931_v6 = vpop.permute.xlu1 %930 }
 0x1d4   :  { %831 = vrot.lane.b32.xlu1 %v826_v57, %s1323_s8  ;;  %847 = vrot.lane.b32.xlu0 %v843_v58, %s1324_s9  ;;  %v933_v10 = vmul.f32 %v931_v6, %v1408_v0  ;;  %v934_v12 = vmul.f32 0.0, %v931_v6 }
 0x1d8   :  { %849 = vrot.lane.b32.xlu1 %v844_v62, %s1324_s9  ;;  %865 = vrot.lane.b32.xlu0 %v861_v61, %s1325_s10  ;;  %v949_v11 = vpop.permute.xlu1 %948 }
 0x1d9   :  { %v951_v13 = vmul.f32 %v949_v11, %v1408_v0  ;;  %v952_v17 = vmul.f32 0.0, %v949_v11 }
 0x1dc   :  { %867 = vrot.lane.b32.xlu1 %v862_v63, %s1325_s10  ;;  %883 = vrot.lane.b32.xlu0 %v879_v1, %s1326_s11 }
 0x1dd   :  { %v985_v15 = vpop.permute.xlu1 %984 }
 0x1de   :  { %v987_v19 = vmul.f32 %v985_v15, %v1408_v0  ;;  %v988_v21 = vmul.f32 0.0, %v985_v15 }
 0x1e0   :  { %885 = vrot.lane.b32.xlu1 %v880_v3, %s1326_s11  ;;  %901 = vrot.lane.b32.xlu0 %v897_v4, %s1327_s12 }
 0x1e2   :  { %v1003_v20 = vpop.permute.xlu1 %1002 }
 0x1e3   :  { %v1005_v22 = vmul.f32 %v1003_v20, %v1408_v0  ;;  %v1006_v26 = vmul.f32 0.0, %v1003_v20 }
 0x1e4   :  { %903 = vrot.lane.b32.xlu1 %v898_v8, %s1327_s12  ;;  %919 = vrot.lane.b32.xlu0 %v915_v7, %s1328_s13 }
 0x1e7   :  { %v496_v24 = vpop.permute.xlu1 %495 }
 0x1e8   :  { %921 = vrot.lane.b32.xlu1 %v916_v9, %s1328_s13  ;;  %937 = vrot.lane.b32.xlu0 %v933_v10, %s1329_s14  ;;  %v498_v53 = vmul.f32 0.0, %v496_v24  ;;  %v499_v7 = vmul.f32 %v496_v24, %v1408_v0 }
 0x1ec   :  { %939 = vrot.lane.b32.xlu1 %v934_v12, %s1329_s14  ;;  %955 = vrot.lane.b32.xlu0 %v951_v13, %s1330_s15 }
 0x1f0   :  { %957 = vrot.lane.b32.xlu1 %v952_v17, %s1330_s15  ;;  %973 = vrot.lane.b32.xlu0 %v969_v16, %s1331_s16 }
 0x1f4   :  { %975 = vrot.lane.b32.xlu1 %v970_v18, %s1331_s16  ;;  %991 = vrot.lane.b32.xlu0 %v987_v19, %s1332_s17 }
 0x1f8   :  { %993 = vrot.lane.b32.xlu1 %v988_v21, %s1332_s17  ;;  %1009 = vrot.lane.b32.xlu0 %v1005_v22, %s1333_s0 }
 0x1fc   :  { %1011 = vrot.lane.b32.xlu1 %v1006_v26, %s1333_s0  ;;  %1027 = vrot.lane.b32.xlu0 %v1023_v25, %s1334_s1 }
 0x1fd   :  { %v511_v27 = vpop.permute.xlu1 %510  ;;  %v513_v28 = vpop.permute.xlu0 %512 }
 0x1fe   :  { %v515_v52 = vsel %vm514_vm3, %v511_v27, %v513_v28  ;;  %v519_v10 = vadd.f32 %v513_v28, %v499_v7  ;;  %vm815_vm3 = vcmask 900096  }
 0x1ff   :  { %v518_v57 = vadd.f32 %v515_v52, %v498_v53 }
 0x200   :  { %1029 = vrot.lane.b32.xlu1 %v1024_v29, %s1334_s1 }
 0x202   :  { %v529_v30 = vpop.permute.xlu1 %528  ;;  %v531_v31 = vpop.permute.xlu0 %530 }
 0x203   :  { %v533_v54 = vsel %vm532_vm4, %v529_v30, %v531_v31  ;;  %v537_v15 = vadd.f32 %v531_v31, %v519_v10  ;;  %vm833_vm4 = vcmask 891904  }
 0x204   :  { %v536_v59 = vadd.f32 %v533_v54, %v518_v57 }
 0x206   :  { %v547_v32 = vpop.permute.xlu1 %546  ;;  %v549_v33 = vpop.permute.xlu0 %548 }
 0x207   :  { %v551_v58 = vsel %vm550_vm5, %v547_v32, %v549_v33  ;;  %v555_v18 = vadd.f32 %v549_v33, %v537_v15  ;;  %vm851_vm5 = vcmask 883712  }
 0x208   :  { %v554_v63 = vadd.f32 %v551_v58, %v536_v59 }
 0x20a   :  { %v565_v34 = vpop.permute.xlu1 %564  ;;  %v1440_v35 = vpop.permute.xlu0 %566 }
 0x20b   :  { %v569_v60 = vsel %vm568_vm6, %v565_v34, %v1440_v35  ;;  %v573_v22 = vadd.f32 %v1440_v35, %v555_v18  ;;  %vm869_vm6 = vcmask 875520  }
 0x20c   :  { %v572_v2 = vadd.f32 %v569_v60, %v554_v63 }
 0x20e   :  { %v583_v36 = vpop.permute.xlu1 %582  ;;  %v1442_v37 = vpop.permute.xlu0 %584 }
 0x20f   :  { %v587_v1 = vsel %vm586_vm7, %v583_v36, %v1442_v37  ;;  %v591_v25 = vadd.f32 %v1442_v37, %v573_v22  ;;  %vm887_vm7 = vcmask 867328  }
 0x210   :  { %v590_v6 = vadd.f32 %v587_v1, %v572_v2 }
 0x212   :  { %v601_v38 = vpop.permute.xlu1 %600  ;;  %v1444_v39 = vpop.permute.xlu0 %602 }
 0x213   :  { %v605_v3 = vsel %vm604_vm8, %v601_v38, %v1444_v39  ;;  %v609_v30 = vadd.f32 %v1444_v39, %v591_v25  ;;  %vm905_vm8 = vcmask 859136  }
 0x214   :  { %v608_v9 = vadd.f32 %v605_v3, %v590_v6 }
 0x216   :  { %v619_v40 = vpop.permute.xlu1 %618  ;;  %v1446_v41 = vpop.permute.xlu0 %620 }
 0x217   :  { %v623_v8 = vsel %vm622_vm9, %v619_v40, %v1446_v41  ;;  %v627_v33 = vadd.f32 %v1446_v41, %v609_v30  ;;  %vm923_vm9 = vcmask 850944  }
 0x218   :  { %v626_v14 = vadd.f32 %v623_v8, %v608_v9 }
 0x21a   :  { %v637_v42 = vpop.permute.xlu1 %636  ;;  %v1448_v43 = vpop.permute.xlu0 %638 }
 0x21b   :  { %v641_v11 = vsel %vm640_vm10, %v637_v42, %v1448_v43  ;;  %v645_v37 = vadd.f32 %v1448_v43, %v627_v33  ;;  %vm941_vm10 = vcmask 842752  }
 0x21c   :  { %v644_v17 = vadd.f32 %v641_v11, %v626_v14 }
 0x21e   :  { %v655_v44 = vpop.permute.xlu1 %654  ;;  %v1450_v45 = vpop.permute.xlu0 %656 }
 0x21f   :  { %v659_v16 = vsel %vm658_vm11, %v655_v44, %v1450_v45  ;;  %v663_v42 = vadd.f32 %v1450_v45, %v645_v37  ;;  %vm959_vm11 = vcmask 834560  }
 0x220   :  { %v662_v21 = vadd.f32 %v659_v16, %v644_v17 }
 0x222   :  { %v673_v46 = vpop.permute.xlu1 %672  ;;  %v1452_v47 = vpop.permute.xlu0 %674 }
 0x223   :  { %v677_v19 = vsel %vm676_vm12, %v673_v46, %v1452_v47  ;;  %vm977_vm12 = vcmask 826368  }
 0x224   :  { %v680_v24 = vadd.f32 %v677_v19, %v662_v21 }
 0x226   :  { %v691_v48 = vpop.permute.xlu1 %690  ;;  %v1454_v49 = vpop.permute.xlu0 %692 }
 0x227   :  { %v695_v23 = vsel %vm694_vm13, %v691_v48, %v1454_v49  ;;  %v681_v48 = vadd.f32 %v1452_v47, %v663_v42  ;;  %vm995_vm13 = vcmask 818176  }
 0x228   :  { %v698_v29 = vadd.f32 %v695_v23, %v680_v24 }
 0x22a   :  { %v709_v50 = vpop.permute.xlu1 %708  ;;  %v1456_v51 = vpop.permute.xlu0 %710 }
 0x22b   :  { %v713_v26 = vsel %vm712_vm14, %v709_v50, %v1456_v51  ;;  %v699_v50 = vadd.f32 %v1454_v49, %v681_v48  ;;  %vm1013_vm14 = vcmask 809984  }
 0x22c   :  { %v716_v32 = vadd.f32 %v713_v26, %v698_v29 }
 0x22d   :  { %v717_v41 = vadd.f32 %v1456_v51, %v699_v50 }
 0x22e   :  { %v727_v55 = vpop.permute.xlu1 %726  ;;  %v1458_v56 = vpop.permute.xlu0 %728 }
 0x22f   :  { %v731_v31 = vsel %vm730_vm15, %v727_v55, %v1458_v56  ;;  %v735_v55 = vadd.f32 %v1458_v56, %v717_v41  ;;  %vm1031_vm15 = vcmask 801792  }
 0x230   :  { %v734_v38 = vadd.f32 %v731_v31, %v716_v32 }
 0x232   :  { %v745_v61 = vpop.permute.xlu1 %744  ;;  %v1461_v62 = vpop.permute.xlu0 %746 }
 0x233   :  { %v749_v34 = vsel %vm748_vm0, %v745_v61, %v1461_v62  ;;  %v753_v58 = vadd.f32 %v1461_v62, %v735_v55  ;;  %vm1043_vm0 = vcmask 121856  }
 0x234   :  { %v752_v40 = vadd.f32 %v749_v34, %v734_v38 }
 0x236   :  { %v761_v4 = vpop.permute.xlu1 %760  ;;  %v776_v5 = vpop.permute.xlu0 %775 }
 0x237   :  { %v763_v39 = vadd.f32 %v761_v4, %v752_v40  ;;  %v764_v60 = vadd.f32 %v761_v4, %v753_v58 }
 0x239   :  { %v783_v54 = vadd.f32 %v776_v5, %v763_v39 }
 0x23a   :  { %v778_v12 = vpop.permute.xlu1 %777  ;;  %v794_v13 = vpop.permute.xlu0 %793 }
 0x23b   :  { %v780_v45 = vsel %vm779_vm1, %v776_v5, %v778_v12  ;;  %v801_v59 = vadd.f32 %v794_v13, %v783_v54 }
 0x23c   :  { %v784_v1 = vadd.f32 %v780_v45, %v764_v60 }
 0x23e   :  { %v796_v0 = vpop.permute.xlu1 %795  ;;  %v812_v20 = vpop.permute.xlu0 %811 }
 0x23f   :  { %v798_v49 = vsel %vm797_vm2, %v794_v13, %v796_v0  ;;  %v819_v63 = vadd.f32 %v812_v20, %v801_v59 }
 0x240   :  { %v802_v3 = vadd.f32 %v798_v49, %v784_v1 }
 0x242   :  { %v814_v27 = vpop.permute.xlu1 %813  ;;  %v830_v28 = vpop.permute.xlu0 %829 }
 0x243   :  { %v816_v51 = vsel %vm815_vm3, %v812_v20, %v814_v27  ;;  %v837_v2 = vadd.f32 %v830_v28, %v819_v63 }
 0x244   :  { %v820_v62 = vadd.f32 %v816_v51, %v802_v3 }
 0x246   :  { %v832_v35 = vpop.permute.xlu1 %831  ;;  %v848_v36 = vpop.permute.xlu0 %847 }
 0x247   :  { %v834_v7 = vsel %vm833_vm4, %v830_v28, %v832_v35  ;;  %v855_v8 = vadd.f32 %v848_v36, %v837_v2 }
 0x248   :  { %v838_v4 = vadd.f32 %v834_v7, %v820_v62 }
 0x24a   :  { %v850_v44 = vpop.permute.xlu1 %849  ;;  %v866_v46 = vpop.permute.xlu0 %865 }
 0x24b   :  { %v852_v5 = vsel %vm851_vm5, %v848_v36, %v850_v44  ;;  %v873_v9 = vadd.f32 %v866_v46, %v855_v8 }
 0x24c   :  { %v856_v14 = vadd.f32 %v852_v5, %v838_v4 }
 0x24e   :  { %v868_v52 = vpop.permute.xlu1 %867  ;;  %v884_v53 = vpop.permute.xlu0 %883 }
 0x24f   :  { %v870_v12 = vsel %vm869_vm6, %v866_v46, %v868_v52  ;;  %v891_v13 = vadd.f32 %v884_v53, %v873_v9 }
 0x250   :  { %v874_v17 = vadd.f32 %v870_v12, %v856_v14 }
 0x252   :  { %v886_v57 = vpop.permute.xlu1 %885  ;;  %v902_v43 = vpop.permute.xlu0 %901 }
 0x253   :  { %v888_v15 = vsel %vm887_vm7, %v884_v53, %v886_v57  ;;  %v909_v16 = vadd.f32 %v902_v43, %v891_v13 }
 0x254   :  { %v892_v21 = vadd.f32 %v888_v15, %v874_v17 }
 0x256   :  { %v904_v47 = vpop.permute.xlu1 %903  ;;  %v920_v61 = vpop.permute.xlu0 %919 }
 0x257   :  { %v906_v0 = vsel %vm905_vm8, %v902_v43, %v904_v47  ;;  %v927_v20 = vadd.f32 %v920_v61, %v909_v16 }
 0x258   :  { %v910_v24 = vadd.f32 %v906_v0, %v892_v21 }
 0x25a   :  { %v922_v56 = vpop.permute.xlu1 %921  ;;  %v938_v6 = vpop.permute.xlu0 %937 }
 0x25b   :  { %v924_v22 = vsel %vm923_vm9, %v920_v61, %v922_v56  ;;  %v945_v23 = vadd.f32 %v938_v6, %v927_v20 }
 0x25c   :  { %v928_v29 = vadd.f32 %v924_v22, %v910_v24 }
 0x25e   :  { %v940_v10 = vpop.permute.xlu1 %939  ;;  %v956_v11 = vpop.permute.xlu0 %955 }
 0x25f   :  { %v942_v27 = vsel %vm941_vm10, %v938_v6, %v940_v10  ;;  %v963_v28 = vadd.f32 %v956_v11, %v945_v23 }
 0x260   :  { %v946_v32 = vadd.f32 %v942_v27, %v928_v29 }
 0x262   :  { %v958_v18 = vpop.permute.xlu1 %957  ;;  %v974_v19 = vpop.permute.xlu0 %973 }
 0x263   :  { %v960_v30 = vsel %vm959_vm11, %v956_v11, %v958_v18  ;;  %v981_v31 = vadd.f32 %v974_v19, %v963_v28 }
 0x264   :  { %v964_v38 = vadd.f32 %v960_v30, %v946_v32 }
 0x266   :  { %v976_v25 = vpop.permute.xlu1 %975  ;;  %v992_v26 = vpop.permute.xlu0 %991 }
 0x267   :  { %v978_v35 = vsel %vm977_vm12, %v974_v19, %v976_v25  ;;  %v999_v36 = vadd.f32 %v992_v26, %v981_v31 }
 0x268   :  { %v982_v42 = vadd.f32 %v978_v35, %v964_v38 }
 0x26a   :  { %v994_v33 = vpop.permute.xlu1 %993  ;;  %v1010_v34 = vpop.permute.xlu0 %1009 }
 0x26b   :  { %v996_v37 = vsel %vm995_vm13, %v992_v26, %v994_v33  ;;  %v1017_v40 = vadd.f32 %v1010_v34, %v999_v36 }
 0x26c   :  { %v1000_v50 = vadd.f32 %v996_v37, %v982_v42 }
 0x26e   :  { %v1012_v44 = vpop.permute.xlu1 %1011  ;;  %v1028_v46 = vpop.permute.xlu0 %1027 }
 0x26f   :  { %v1014_v48 = vsel %vm1013_vm14, %v1010_v34, %v1012_v44  ;;  %v1035_v39 = vadd.f32 %v1028_v46, %v1017_v40 }
 0x270   :  { %v1018_v52 = vadd.f32 %v1014_v48, %v1000_v50 }
 0x271   :  { %1039 = vrot.lane.b32.xlu0 %v1035_v39, %s1335_s18 }
 0x272   :  { %v1030_v53 = vpop.permute.xlu1 %1029 }
 0x273   :  { %v1032_v41 = vsel %vm1031_vm15, %v1028_v46, %v1030_v53 }
 0x274   :  { %v1036_v54 = vadd.f32 %v1032_v41, %v1018_v52 }
 0x276   :  { %1041 = vrot.lane.b32.xlu1 %v1036_v54, %s1335_s18 }
 0x2e3   :  { %v1040_v55 = vpop.permute.xlu0 %1039 }
 0x2e8   :  { %v1042_v57 = vpop.permute.xlu1 %1041 }
 0x2e9   :  { %v1044_v43 = vsel %vm1043_vm0, %v1040_v55, %v1042_v57 }
 0x2ea   :  { %1046 = vst [vmem:[#allocation4] sm:$0xff] %v1044_v43 }
 0x2eb   :  { %1258 = shalt.err (!%p1255_p4)
}
 0x2ec   :  { %s1259_s23 = scalar_lea.hbm %s1500_s3, 128 }
 0x2ed   :  { %p1260_p5 = scmp.ne.s32.totalorder %s1500_s3, %s1259_s23  ;;  %p1263_p6 = scmp.lt.u32.totalorder %s1259_s23, %s1500_s3 }
 0x2ef   :  { %p1265_p7 = pnand %p1263_p6, %p1260_p5 }
 0x2f1   :  { %1268 = shalt.err (!%p1265_p7)
}
 0x2f2   :  { %1056 = dma.vmem_to_hbm [thread:$0]  %s1054_s2, 128, %s1500_s3, [#allocation5]  }
 0x2f3   :  { %1269 = dma.done.wait [#allocation5], 128  }
 0x2f4   :  { %1270 = vsyncadd [#allocation5], 4294967168 }
 0x2f5   :  { %1060 = vsyncpa [#allocation5], 1 }

</bundles_post_ra>
